<compile_context>
chip_gen: v7x
topology: tpu7x:2x2x1
jax: 0.10.0
libtpu: 0.0.40
codegen_flags: <defaults>
</compile_context>

<pallas_src>
import functools
import math

import jax
import jax.numpy as jnp
from jax.experimental import pallas as pl
from jax.experimental.pallas import tpu as pltpu


def _packed_linear_kernel(x_ref, w_ref, b_ref, o_ref, *, plan, acc_dtype):
    """One E-tile of the packed (grouped) linear.

    x_ref: (M_in, E_tile, c_in_per)   activations (compute dtype)
    w_ref: (NW,  K,      N)           pre-transposed weights, VMEM resident
    b_ref: (M,   1,      c_out_per)   f32 bias, VMEM resident
    o_ref: (M,   E_tile, c_out_per)   output (estimator-major layout)

    `plan[mo]` is a static tuple of (input_slot, input_col_start, weight_index)
    sub-blocks whose results are concatenated along the lane axis and stored as
    one slab for output estimator `mo`.
    """
    k = w_ref.shape[1]
    slab_cache = {}

    def get_slab(si):
        if si not in slab_cache:
            slab_cache[si] = x_ref[si]          # (E_tile, c_in_per)
        return slab_cache[si]

    for mo, sub in enumerate(plan):
        parts = []
        for (si, c0, wi) in sub:
            xm = get_slab(si)
            xg = xm if (c0 == 0 and xm.shape[1] == k) else xm[:, c0:c0 + k]
            parts.append(
                jnp.dot(xg, w_ref[wi], preferred_element_type=acc_dtype))
        y = parts[0] if len(parts) == 1 else jnp.concatenate(parts, axis=-1)
        # f32 epilogue (bias add) then cast once on store.
        o_ref[mo] = (y + b_ref[mo].astype(acc_dtype)).astype(o_ref.dtype)


def _choose_row_tile(n_rows, bytes_per_row):
    """Pick an E tile: ~512 rows, capped so double-buffered tiles stay small."""
    budget = 6 * 2**20                                   # ~6 MiB of row tiles
    max_rows = max(8, budget // max(1, 2 * bytes_per_row))
    tile = min(512, int(max_rows))
    if tile >= n_rows:
        return n_rows                                    # full dim -> always legal
    return max(8, (tile // 8) * 8)                       # sublane aligned


def packed_linear_pallas(x3, w3, b3, plan, out_dtype):
    """x3: (M_in, E, c_in), w3: (NW, K, N), b3: (M, 1, c_out) -> (M, E, c_out)."""
    m_in, e_rows, c_in = x3.shape
    n_w, k_dim, n_dim = w3.shape
    m_out, _, c_out = b3.shape

    x_item = jnp.dtype(x3.dtype).itemsize
    o_item = jnp.dtype(out_dtype).itemsize
    row_bytes = m_in * c_in * x_item + m_out * c_out * o_item
    e_tile = _choose_row_tile(e_rows, row_bytes)
    grid = (pl.cdiv(e_rows, e_tile),)

    w_bytes = int(w3.size) * jnp.dtype(w3.dtype).itemsize
    b_bytes = int(b3.size) * jnp.dtype(b3.dtype).itemsize
    x_tile_bytes = m_in * e_tile * c_in * x_item
    o_tile_bytes = m_out * e_tile * c_out * o_item
    needed = 2 * (x_tile_bytes + o_tile_bytes) + 2 * (w_bytes + b_bytes)
    vmem_limit = int(min(max(2 * needed, 16 * 2**20), 60 * 2**20))

    cost = pl.CostEstimate(
        flops=2 * e_rows * n_w * k_dim * n_dim,
        transcendentals=0,
        bytes_accessed=int(x3.size) * x_item + w_bytes + b_bytes
        + m_out * e_rows * c_out * o_item,
    )

    kernel = functools.partial(
        _packed_linear_kernel, plan=plan, acc_dtype=jnp.float32)

    return pl.pallas_call(
        kernel,
        out_shape=jax.ShapeDtypeStruct((m_out, e_rows, c_out), out_dtype),
        grid=grid,
        in_specs=[
            pl.BlockSpec((m_in, e_tile, c_in), lambda i: (0, i, 0)),
            pl.BlockSpec((n_w, k_dim, n_dim), lambda i: (0, 0, 0)),   # resident
            pl.BlockSpec((m_out, 1, c_out), lambda i: (0, 0, 0)),     # resident
        ],
        out_specs=pl.BlockSpec((m_out, e_tile, c_out), lambda i: (0, i, 0)),
        compiler_params=pltpu.CompilerParams(
            dimension_semantics=("parallel",),       # E tiles shard across TCs on v7x
            vmem_limit_bytes=vmem_limit,
        ),
        cost_estimate=cost,
    )(x3, w3, b3)


class PackedLinearPallas:
    """JAX/Pallas port of PackedLinear (implementation='legacy', rearrange=True)."""

    def __init__(self, in_features, out_features, alpha, num_estimators,
                 gamma=1, bias=True, first=False, last=False,
                 *, key, compute_dtype=jnp.float32):
        assert alpha > 0 and gamma >= 1 and num_estimators >= 1
        extended_in = int(in_features * (1 if first else alpha))
        extended_out = int(out_features * (num_estimators if last else alpha))
        groups = num_estimators * gamma if not first else 1
        # Mirrors the legacy torch_uncertainty padding quirk (adds num_estimators,
        # not a multiple of groups); guard the latent gamma>1 shape bug loudly.
        if extended_in % groups:
            extended_in += num_estimators - extended_in % groups
        if extended_out % groups:
            extended_out += num_estimators - extended_out % groups
        assert extended_in % groups == 0 and extended_out % groups == 0, (
            "legacy padding rule did not make features divisible by groups "
            "(known torch_uncertainty quirk when gamma > 1)")
        assert extended_out % num_estimators == 0

        self.first = first
        self.num_estimators = num_estimators
        self.gamma = gamma
        self.groups = groups
        self.in_features = extended_in // groups      # per-group in features
        self.out_features = extended_out // groups    # per-group out features
        self.extended_in_features = extended_in
        self.extended_out_features = extended_out
        self.compute_dtype = compute_dtype

        m = num_estimators
        self.m_in = 1 if first else m
        self.c_in_per = extended_in // self.m_in
        self.c_out_per = extended_out // m

        k_w, k_b = jax.random.split(key)
        # Legacy weight is (extended_out, in_features_per_group, 1),
        # kaiming_uniform(a=sqrt(5)) -> bound = 1/sqrt(fan_in).
        w_bound = 1.0 / math.sqrt(self.in_features)
        self.weight = jax.random.uniform(
            k_w, (extended_out, self.in_features), jnp.float32, -w_bound, w_bound)
        if bias:
            # torch computes fan_in of weight[0] (shape (in_features, 1)) -> 1.
            self.bias = jax.random.uniform(
                k_b, (extended_out,), jnp.float32, -1.0, 1.0)
        else:
            self.bias = jnp.zeros((extended_out,), jnp.float32)

        # ---- pre-packed kernel-side parameters (built once, outside the kernel) ----
        if not first:
            # (G, Cout_g, Cin_g) -> (G, Cin_g, Cout_g): MXU-native (K, N) orientation.
            w3 = self.weight.reshape(groups, self.out_features, self.in_features)
            w3 = jnp.transpose(w3, (0, 2, 1))
            plan = tuple(
                tuple((mo, gi * self.in_features, mo * gamma + gi)
                      for gi in range(gamma))
                for mo in range(m))
        else:
            # Single conv group; split the (Cin, Cout_total) weight by output estimator.
            wt = jnp.transpose(self.weight, (1, 0))               # (Cin, extended_out)
            w3 = jnp.transpose(
                wt.reshape(self.in_features, m, self.c_out_per), (1, 0, 2))
            plan = tuple(((0, 0, mo),) for mo in range(m))
        self._w3 = w3.astype(compute_dtype)
        self._b3 = self.bias.reshape(m, 1, self.c_out_per)        # f32 epilogue
        self._plan = plan

    def __call__(self, x):
        m = self.num_estimators
        b, c = x.shape
        assert c == self.c_in_per, f"expected {self.c_in_per} features, got {c}"
        if self.first:
            e = b
        else:
            assert b % m == 0
            e = b // m
        # '(m e) c -> (m, e, c)' is a free view; the '(m c)' grouping is done by
        # the kernel's static column slices -> no HBM transpose.
        x3 = x.reshape(self.m_in, e, self.c_in_per).astype(self.compute_dtype)
        out3 = packed_linear_pallas(x3, self._w3, self._b3, self._plan,
                                    out_dtype=self.compute_dtype)
        # (m, e, c_out_per) -> ((m e), c_out_per): contiguous, no transpose.
        return out3.reshape(m * e, self.c_out_per)


def _reference_forward(layer, x):
    """Pure-JAX reference mirroring F.conv1d(groups=G, k=1) + einops rearranges."""
    m, g = layer.num_estimators, layer.groups
    b, c = x.shape
    if not layer.first:
        e = b // m
        xr = x.reshape(m, e, c).transpose(1, 0, 2).reshape(e, m * c)
    else:
        e = b
        xr = x
    cin_g = layer.in_features
    xg = xr.reshape(e, g, cin_g)
    wg = layer.weight.reshape(g, layer.out_features, cin_g)
    y = jnp.einsum("egi,goi->ego", xg, wg) + layer.bias.reshape(g, layer.out_features)
    y = y.reshape(e, g * layer.out_features)
    c_out = layer.extended_out_features // m
    return y.reshape(e, m, c_out).transpose(1, 0, 2).reshape(m * e, c_out)


def _run_case(name, layer, x, atol, rtol):
    out = jax.block_until_ready(layer(x))
    ref = _reference_forward(layer, x)
    assert out.shape == ref.shape, (name, out.shape, ref.shape)
    out32 = out.astype(jnp.float32)
    err = float(jnp.max(jnp.abs(out32 - ref)))
    assert bool(jnp.allclose(out32, ref, atol=atol, rtol=rtol)), (name, err)


if __name__ == "__main__":
    key = jax.random.PRNGKey(0)
    keys = jax.random.split(key, 8)

    # Case 1: hidden layer, gamma=1 (in=16, out=32, alpha=2, M=2 -> G=2).
    layer1 = PackedLinearPallas(16, 32, 2.0, 2, gamma=1, bias=True, key=keys[0])
    x1 = jax.random.normal(keys[1], (2 * 4, layer1.extended_in_features // 2),
                           jnp.float32)
    _run_case("hidden_gamma1", layer1, x1, atol=1e-4, rtol=1e-4)

    # Case 2: hidden layer, gamma=2 (exercises multi-group fusion / in-kernel concat).
    layer2 = PackedLinearPallas(32, 64, 2.0, 2, gamma=2, bias=True, key=keys[2])
    x2 = jax.random.normal(keys[3], (2 * 4, layer2.extended_in_features // 2),
                           jnp.float32)
    _run_case("hidden_gamma2", layer2, x2, atol=1e-4, rtol=1e-4)

    # Case 3: first layer (groups=1, output still split across estimators).
    layer3 = PackedLinearPallas(16, 32, 2.0, 2, gamma=1, bias=True, first=True,
                                key=keys[4])
    x3 = jax.random.normal(keys[5], (6, layer3.extended_in_features), jnp.float32)
    _run_case("first_layer", layer3, x3, atol=1e-4, rtol=1e-4)

    # Case 4: bf16 MXU compute path (f32 accumulate + f32 bias inside the kernel).
    layer4 = PackedLinearPallas(16, 32, 2.0, 2, gamma=1, bias=True,
                                compute_dtype=jnp.bfloat16, key=keys[6])
    x4 = jax.random.normal(keys[7], (2 * 4, layer4.extended_in_features // 2),
                           jnp.float32)
    _run_case("bf16_path", layer4, x4, atol=1e-1, rtol=5e-2)

    print("KERNEL_OK")
</pallas_src>

<mosaic_0001>
module attributes {stable_mosaic.version = 11 : i64} {
  func.func @_packed_linear_kernel(%arg0: i32, %arg1: memref<2x4x16xf32, #tpu.memory_space<vmem>>, %arg2: memref<2x16x32xf32, #tpu.memory_space<vmem>>, %arg3: memref<2x1x32xf32, #tpu.memory_space<vmem>>, %arg4: memref<2x4x32xf32, #tpu.memory_space<vmem>>) attributes {dimension_semantics = [#tpu.dimension_semantics<parallel>], iteration_bounds = array<i64: 1>, scalar_prefetch = 0 : i64, scratch_operands = 0 : i64, tpu.core_type = #tpu.core_type<tc>, window_params = [{transform_indices = @transform_0, window_bounds = array<i64: 2, 4, 16>}, {pipeline_mode = #tpu.pipeline_mode<synchronous>, transform_indices = @transform_1, window_bounds = array<i64: 2, 16, 32>}, {pipeline_mode = #tpu.pipeline_mode<synchronous>, transform_indices = @transform_2, window_bounds = array<i64: 2, 1, 32>}, {transform_indices = @transform_3, window_bounds = array<i64: 2, 4, 32>}]} {
    %c0 = arith.constant 0 : index
    %c0_0 = arith.constant 0 : index
    %c0_1 = arith.constant 0 : index
    %0 = vector.load %arg1[%c0, %c0_0, %c0_1] : memref<2x4x16xf32, #tpu.memory_space<vmem>>, vector<1x4x16xf32>
    %1 = vector.shape_cast %0 : vector<1x4x16xf32> to vector<4x16xf32>
    %c0_2 = arith.constant 0 : index
    %c0_3 = arith.constant 0 : index
    %c0_4 = arith.constant 0 : index
    %2 = vector.load %arg2[%c0_2, %c0_3, %c0_4] : memref<2x16x32xf32, #tpu.memory_space<vmem>>, vector<1x16x32xf32>
    %3 = vector.shape_cast %2 : vector<1x16x32xf32> to vector<16x32xf32>
    %cst = arith.constant dense<0.000000e+00> : vector<4x32xf32>
    %4 = tpu.matmul %1, %3, %cst {dimension_numbers = #tpu.dot_dimension_numbers<[1], [0], [0], [1], [0, 0, 1, 1], [], []>} : vector<4x16xf32>, vector<16x32xf32>, vector<4x32xf32> -> vector<4x32xf32>
    %c0_5 = arith.constant 0 : index
    %c0_6 = arith.constant 0 : index
    %c0_7 = arith.constant 0 : index
    %5 = vector.load %arg3[%c0_5, %c0_6, %c0_7] : memref<2x1x32xf32, #tpu.memory_space<vmem>>, vector<1x1x32xf32>
    %6 = vector.shape_cast %5 : vector<1x1x32xf32> to vector<1x32xf32>
    %7 = vector.broadcast %6 : vector<1x32xf32> to vector<4x32xf32>
    %8 = arith.addf %4, %7 : vector<4x32xf32>
    %c0_8 = arith.constant 0 : index
    %c0_9 = arith.constant 0 : index
    %c0_10 = arith.constant 0 : index
    %9 = vector.load %arg4[%c0_8, %c0_9, %c0_10] : memref<2x4x32xf32, #tpu.memory_space<vmem>>, vector<1x4x32xf32>
    %10 = vector.shape_cast %9 : vector<1x4x32xf32> to vector<4x32xf32>
    %11 = vector.shape_cast %8 : vector<4x32xf32> to vector<1x4x32xf32>
    tpu.vector_store %arg4[%c0_8, %c0_9, %c0_10], %11 {strides = array<i32>} : memref<2x4x32xf32, #tpu.memory_space<vmem>>, vector<1x4x32xf32>,
    %c1 = arith.constant 1 : index
    %c0_11 = arith.constant 0 : index
    %c0_12 = arith.constant 0 : index
    %12 = vector.load %arg1[%c1, %c0_11, %c0_12] : memref<2x4x16xf32, #tpu.memory_space<vmem>>, vector<1x4x16xf32>
    %13 = vector.shape_cast %12 : vector<1x4x16xf32> to vector<4x16xf32>
    %c1_13 = arith.constant 1 : index
    %c0_14 = arith.constant 0 : index
    %c0_15 = arith.constant 0 : index
    %14 = vector.load %arg2[%c1_13, %c0_14, %c0_15] : memref<2x16x32xf32, #tpu.memory_space<vmem>>, vector<1x16x32xf32>
    %15 = vector.shape_cast %14 : vector<1x16x32xf32> to vector<16x32xf32>
    %cst_16 = arith.constant dense<0.000000e+00> : vector<4x32xf32>
    %16 = tpu.matmul %13, %15, %cst_16 {dimension_numbers = #tpu.dot_dimension_numbers<[1], [0], [0], [1], [0, 0, 1, 1], [], []>} : vector<4x16xf32>, vector<16x32xf32>, vector<4x32xf32> -> vector<4x32xf32>
    %c1_17 = arith.constant 1 : index
    %c0_18 = arith.constant 0 : index
    %c0_19 = arith.constant 0 : index
    %17 = vector.load %arg3[%c1_17, %c0_18, %c0_19] : memref<2x1x32xf32, #tpu.memory_space<vmem>>, vector<1x1x32xf32>
    %18 = vector.shape_cast %17 : vector<1x1x32xf32> to vector<1x32xf32>
    %19 = vector.broadcast %18 : vector<1x32xf32> to vector<4x32xf32>
    %20 = arith.addf %16, %19 : vector<4x32xf32>
    %c1_20 = arith.constant 1 : index
    %c0_21 = arith.constant 0 : index
    %c0_22 = arith.constant 0 : index
    %21 = vector.load %arg4[%c1_20, %c0_21, %c0_22] : memref<2x4x32xf32, #tpu.memory_space<vmem>>, vector<1x4x32xf32>
    %22 = vector.shape_cast %21 : vector<1x4x32xf32> to vector<4x32xf32>
    %23 = vector.shape_cast %20 : vector<4x32xf32> to vector<1x4x32xf32>
    tpu.vector_store %arg4[%c1_20, %c0_21, %c0_22], %23 {strides = array<i32>} : memref<2x4x32xf32, #tpu.memory_space<vmem>>, vector<1x4x32xf32>,
    return
  }
  func.func @transform_0(%arg0: i32) -> (i32, i32, i32) {
    %c0_i32 = arith.constant 0 : i32
    %c0_i32_0 = arith.constant 0 : i32
    %c0_i32_1 = arith.constant 0 : i32
    return %c0_i32, %arg0, %c0_i32_0 : i32, i32, i32
  }
  func.func @transform_1(%arg0: i32) -> (i32, i32, i32) {
    %c0_i32 = arith.constant 0 : i32
    %c0_i32_0 = arith.constant 0 : i32
    %c0_i32_1 = arith.constant 0 : i32
    %c0_i32_2 = arith.constant 0 : i32
    return %c0_i32, %c0_i32_0, %c0_i32_1 : i32, i32, i32
  }
  func.func @transform_2(%arg0: i32) -> (i32, i32, i32) {
    %c0_i32 = arith.constant 0 : i32
    %c0_i32_0 = arith.constant 0 : i32
    %c0_i32_1 = arith.constant 0 : i32
    %c0_i32_2 = arith.constant 0 : i32
    return %c0_i32, %c0_i32_0, %c0_i32_1 : i32, i32, i32
  }
  func.func @transform_3(%arg0: i32) -> (i32, i32, i32) {
    %c0_i32 = arith.constant 0 : i32
    %c0_i32_0 = arith.constant 0 : i32
    %c0_i32_1 = arith.constant 0 : i32
    return %c0_i32, %arg0, %c0_i32_0 : i32, i32, i32
  }
}

</mosaic_0001>

<bundles_post_ra>
// kernel: tpu_custom_call.1
= control target key start
LH: loop header
LB: loop body
LE: loop exit
PB: predicated region body
PF: predicated region fallthrough
CT: control target
= control target key end

     0   :  { %8 = vsyncpa [#allocation3], 0  ;;  %s426_s0 = inlined_call_operand.hbm [shape: f32[2,4,16], index: 0, kind: input, shape index: {}]   ;;  %s427_s1 = inlined_call_operand.hbm [shape: f32[2,16,32], index: 1, kind: input, shape index: {}]   ;;  %s428_s2 = inlined_call_operand.vmem [shape: f32[2,1,32], index: 2, kind: input, shape index: {}]   ;;  %s429_s3 = inlined_call_operand.hbm [shape: f32[2,4,32], index: 3, kind: output, shape index: {}]  }
   0x1   :  { %9 = vsyncpa [#allocation6], 0 }
   0x2   :  { %10 = vsyncpa [#allocation4], 0  ;;  %s348_s12 = smov [#allocation2]   ;;  %s276_s16 = scalar_lea.hbm %s426_s0, 128 }
   0x3   :  { %s16_s13 = sshll.u32 %s348_s12, 4  ;;  %p277_p0 = scmp.ne.s32.totalorder %s426_s0, %s276_s16  ;;  %s17_s13 = int_to_ptr.vmem [resolvable:$true] %s16_s13 }
   0x4   :  { %p280_p1 = scmp.lt.u32.totalorder %s276_s16, %s426_s0 }
   0x6   :  { %p282_p2 = pnand %p280_p1, %p277_p0 }
   0x8   :  { %285 = shalt.err (!%p282_p2)
}
   0x9   :  { %s286_s21 = scalar_lea.vmem %s17_s13, 128  ;;  %p291_p4 = scmp.lt.s32.totalorder %s17_s13, %s17_s13 }
   0xa   :  { %p287_p3 = scmp.ne.s32.totalorder %s17_s13, %s286_s21  ;;  %p292_p5 = scmp.lt.s32.totalorder %s286_s21, %s286_s21 }
   0xc   :  { %p293_p6 = por %p292_p5, %p291_p4 }
   0xe   :  { %p294_p7 = pnand %p293_p6, %p287_p3 }
  0x10   :  { %297 = shalt.err (!%p294_p7)
}
  0x11   :  { %s349_s22 = smov 64   ;;  %s350_s23 = smov 4  }
  0x12   :  { %22 = dma.hbm_to_vmem [thread:$0]  %s426_s0, 128, %s17_s13, [#allocation3], %s349_s22, %s349_s22, %s350_s23  }
  0x13   :  { %s351_s26 = smov [#allocation5]   ;;  %s298_s30 = scalar_lea.hbm %s427_s1, 512 }
  0x14   :  { %s28_s27 = sshll.u32 %s351_s26, 4  ;;  %p299_p8 = scmp.ne.s32.totalorder %s427_s1, %s298_s30  ;;  %s29_s27 = int_to_ptr.vmem [resolvable:$true] %s28_s27 }
  0x15   :  { %p302_p9 = scmp.lt.u32.totalorder %s298_s30, %s427_s1 }
  0x17   :  { %p304_p10 = pnand %p302_p9, %p299_p8 }
  0x19   :  { %307 = shalt.err (!%p304_p10)
}
  0x1a   :  { %s308_s8 = scalar_lea.vmem %s29_s27, 512  ;;  %p313_p12 = scmp.lt.s32.totalorder %s29_s27, %s29_s27 }
  0x1b   :  { %p309_p11 = scmp.ne.s32.totalorder %s29_s27, %s308_s8  ;;  %p314_p13 = scmp.lt.s32.totalorder %s308_s8, %s308_s8 }
  0x1d   :  { %p315_p0 = por %p314_p13, %p313_p12 }
  0x1f   :  { %p316_p1 = pnand %p315_p0, %p309_p11 }
  0x21   :  { %319 = shalt.err (!%p316_p1)
}
  0x22   :  { %s352_s0 = smov 128   ;;  %s353_s9 = smov 8  }
  0x23   :  { %34 = dma.hbm_to_vmem [thread:$0]  %s427_s1, 512, %s29_s27, [#allocation6], %s352_s0, %s352_s0, %s353_s9  }
  0x24   :  { %342 = dma.done.wait [#allocation3], 128  }
  0x25   :  { %343 = vsyncadd [#allocation3], 4294967168 }
  0x26   :  { %344 = dma.done.wait [#allocation6], 512  }
  0x27   :  { %345 = vsyncadd [#allocation6], 4294966784  ;;  %v354_v0 = vmov 0.0|0.0   ;;  %vm355_vm0 = vmmov 0   ;;  %v356_v1 = vmov 0.0   ;;  %v44_v2 = vld [vmem:[#allocation5] sm:$0xff] }
  0x28   :  { %260 = vmatprep.subr.bf16.mxu0 %v354_v0  ;;  %263 = vmatprep.subr.bf16.mxu1 %v354_v0  ;;  %v45_v3 = vld [vmem:[#allocation5 + $0x8] sm:$0xff]  ;;  %v132_v4 = vld [vmem:[#allocation5 + $0x10] sm:$0xff]  ;;  %v133_v6 = vld [vmem:[#allocation5 + $0x18] sm:$0xff]  ;;  %vm53_vm1 = vcmask 130048   ;;  %s357_s15 = smov [#allocation7]   ;;  %vm127_vm2 = vcmask 257024  }
  0x29   :  { %250 = vmatprep.mubr.msk.f32.mxu0 %vm355_vm0, %v356_v1  ;;  %257 = vmatprep.mubr.msk.f32.mxu1 %vm355_vm0, %v356_v1  ;;  %v261_v5 = vpack.c.bf16 %v45_v3, %v44_v2  ;;  %v264_v7 = vpack.c.bf16 %v133_v6, %v132_v4  ;;  %v43_v8 = vld [vmem:[#allocation2] sm:$0xf]  ;;  %v130_v9 = vld [vmem:[#allocation2 + $0x4] sm:$0xf]  ;;  %s222_s16 = sshll.u32 %s357_s15, 4  ;;  %s223_s16 = int_to_ptr.vmem [resolvable:$true] %s222_s16 }
  0x2a   :  { %v235_v10 = vld [vmem:[%s428_s2] ss:$0 sm:$0xff]  ;;  %v238_v11 = vld [vmem:[%s428_s2 + $0x1] ss:$0 sm:$0xff]  ;;  %s320_s17 = scalar_lea.vmem %s223_s16, 128  ;;  %p325_p3 = scmp.lt.s32.totalorder %s223_s16, %s223_s16 }
  0x2b   :  { %262 = vmatpush3.bf16.msra.mxu0 %v261_v5  ;;  %265 = vmatpush3.bf16.msra.mxu1 %v264_v7  ;;  %p321_p2 = scmp.ne.s32.totalorder %s223_s16, %s320_s17  ;;  %p326_p4 = scmp.lt.s32.totalorder %s320_s17, %s320_s17 }
  0x2d   :  { %p327_p5 = por %p326_p4, %p325_p3 }
  0x2e   :  { %251 = vmatmul.mubr.msk.f32.vlgmr.msra.gmra.mrb[0].mxu0 %vm53_vm1, %v43_v8  ;;  %258 = vmatmul.mubr.msk.f32.vlgmr.msra.gmra.mrb[0].mxu1 %vm53_vm1, %v130_v9 }
  0x2f   :  { %p328_p6 = pnand %p327_p5, %p321_p2 }
 0x101   :  { %v123_v12 = vpop.f32.mrb[0].mxu0  ;;  %v211_v14 = vpop.f32.mrb[0].mxu1 }
 0x102   :  { %v124_v13 = vadd.f32 %v235_v10, %v123_v12  ;;  %v252_v15 = vpop.f32.mrb[1].mxu0  ;;  %v212_v16 = vadd.f32 %v238_v11, %v211_v14  ;;  %v259_v17 = vpop.f32.mrb[1].mxu1 }
 0x104   :  { %128 = vst.msk [vmem:[#allocation7] sm:$0xf] %vm127_vm2, %v124_v13  ;;  %216 = vst.msk [vmem:[#allocation7 + $0x4] sm:$0xf] %vm127_vm2, %v212_v16 }
 0x105   :  { %331 = shalt.err (!%p328_p6)
}
 0x106   :  { %s332_s19 = scalar_lea.hbm %s429_s3, 128 }
 0x107   :  { %p333_p7 = scmp.ne.s32.totalorder %s429_s3, %s332_s19  ;;  %p336_p8 = scmp.lt.u32.totalorder %s332_s19, %s429_s3 }
 0x109   :  { %p338_p9 = pnand %p336_p8, %p333_p7 }
 0x10b   :  { %341 = shalt.err (!%p338_p9)
}
 0x10c   :  { %228 = dma.vmem_to_hbm [thread:$0]  %s223_s16, 128, %s429_s3, [#allocation4], %s349_s22, %s349_s22, %s350_s23  }
 0x10d   :  { %346 = dma.done.wait [#allocation4], 128  }
 0x10e   :  { %347 = vsyncadd [#allocation4], 4294967168 }
 0x10f   :  { %232 = vsyncpa [#allocation3], 1 }
 0x110   :  { %233 = vsyncpa [#allocation6], 1 }
 0x111   :  { %234 = vsyncpa [#allocation4], 1 }

</bundles_post_ra>
